<compile_context>
chip_gen: v5e
topology: v5e:2x2
jax: 0.10.0
libtpu: 0.0.40
codegen_flags: <defaults>
</compile_context>

<pallas_src>
import functools

import jax
import jax.numpy as jnp
from jax.experimental import pallas as pl
from jax.experimental.pallas import tpu as pltpu


def _round_up(x, m):
    return (x + m - 1) // m * m


def _sublane_multiple(dtype):
    # rows packed per sublane group: f32 -> 8, bf16/f16 -> 16, int8/fp8 -> 32
    return 8 * max(1, 4 // jnp.dtype(dtype).itemsize)


def _default_vmem_limit_bytes():
    """~75% of this generation's per-core VMEM (leave headroom for compiler scratch)."""
    try:
        info = pltpu.get_tpu_info()
        cap = getattr(info, "vmem_capacity_bytes", None)
        if cap:
            return int(cap) * 3 // 4
    except Exception:
        pass
    # Conservative fallback: 75% of v7x's 64 MiB per-TensorCore VMEM.
    return 48 * 1024 * 1024


def mlm_head_kernel(x_ref, w1_ref, b1_ref, gamma_ref, beta_ref,
                    w2_ref, b2_ref, o_ref, h_ref, *, eps):
    # x_ref:   [tm, H]  input hidden-state row tile (stored dtype)
    # w1_ref:  [H, H]   transform dense weight (in, out), stored dtype
    # b1_ref:  [1, H]   transform dense bias
    # gamma_ref/beta_ref: [1, H] LayerNorm affine params
    # w2_ref:  [H, tn]  decoder weight tile (in, out), stored dtype
    # b2_ref:  [1, tn]  decoder bias tile
    # o_ref:   [tm, tn] output logits tile
    # h_ref:   [tm, H]  VMEM scratch: post-LayerNorm activation cached across
    #                   all vocab tiles of the same row tile, in w2's dtype so
    #                   the decoder matmul uses the native (e.g. bf16) MXU path.

    # Transform dense + gelu + LayerNorm: only once per row tile.
    @pl.when(pl.program_id(1) == 0)
    def _():
        x = x_ref[...]
        if x.dtype != w1_ref.dtype:
            # Match the weight's stored dtype so the MXU runs its native path
            # (no in-kernel promotion of a bf16 weight tile to f32).
            x = x.astype(w1_ref.dtype)
        h = jnp.dot(x, w1_ref[...], preferred_element_type=jnp.float32)
        h = h + b1_ref[...].astype(jnp.float32)
        # exact gelu: 0.5 * x * (1 + erf(x / sqrt(2)))  (PyTorch F.gelu default)
        h = 0.5 * h * (1.0 + jax.lax.erf(h * jnp.float32(0.7071067811865476)))
        # LayerNorm over the hidden dim (f32 math), cast on store to h's dtype.
        mean = jnp.mean(h, axis=-1, keepdims=True)
        centered = h - mean
        var = jnp.mean(centered * centered, axis=-1, keepdims=True)
        inv = jax.lax.rsqrt(var + jnp.float32(eps))
        hn = (centered * inv * gamma_ref[...].astype(jnp.float32)
              + beta_ref[...].astype(jnp.float32))
        h_ref[...] = hn.astype(h_ref.dtype)

    # Decoder matmul on the cached activation; LHS/RHS share w2's stored dtype,
    # accumulation is f32 on the MXU.
    y = jnp.dot(h_ref[...], w2_ref[...], preferred_element_type=jnp.float32)
    y = y + b2_ref[...].astype(jnp.float32)
    o_ref[...] = y.astype(o_ref.dtype)


def pad_decoder_params(params, *, tn=2048):
    """One-time pad of the decoder weight/bias along the vocab dim to a multiple
    of the vocab tile. Avoids re-copying the (potentially ~100 MB) decoder
    weight inside every forward call."""
    w2 = params["decoder_w"]
    b2 = params["decoder_b"].reshape(1, -1)
    V = w2.shape[1]
    tn_eff = min(tn, _round_up(V, 128))
    Vp = _round_up(V, tn_eff)
    out = dict(params)
    if Vp != V:
        out["decoder_w"] = jnp.pad(w2, ((0, 0), (0, Vp - V)))
        out["decoder_b"] = jnp.pad(b2, ((0, 0), (0, Vp - V)))
    else:
        out["decoder_b"] = b2
    return out


def bert_only_mlm_head(sequence_output, params, *, vocab_size=None, eps=1e-12,
                       tm=512, tn=2048, out_dtype=None):
    """sequence_output: [B, S, H] -> prediction_scores [B, S, V].

    vocab_size: true vocab size V (defaults to decoder_w.shape[1]); pass it if
                params were pre-padded with pad_decoder_params().
    out_dtype:  logits dtype (default: input dtype). Use jnp.bfloat16 to halve
                the logits HBM writeback when the consumer allows it.
    """
    B, S, H = sequence_output.shape
    Vs = params["decoder_w"].shape[1]          # stored (possibly pre-padded) width
    V = Vs if vocab_size is None else vocab_size
    M = B * S
    if out_dtype is None:
        out_dtype = sequence_output.dtype

    x2d = sequence_output.reshape(M, H)
    w1 = params["dense_w"]
    w2 = params["decoder_w"]
    b1 = params["dense_b"].reshape(1, H)
    gamma = params["ln_gamma"].reshape(1, H)
    beta = params["ln_beta"].reshape(1, H)
    b2 = params["decoder_b"].reshape(1, -1)

    # --- vocab tiling (lane axis): prefer pre-padded weights; fall back to a
    # per-call pad only if the stored width is ragged w.r.t. the tile.
    tn_eff = min(tn, _round_up(Vs, 128))
    if Vs % tn_eff != 0:
        Vp = _round_up(Vs, tn_eff)
        w2 = jnp.pad(w2, ((0, 0), (0, Vp - Vs)))
        b2 = jnp.pad(b2, ((0, 0), (0, Vp - Vs)))
    else:
        Vp = Vs

    # --- row tiling (sublane axis): align to the packing of every dtype that
    # tiles along rows (input, output logits, h scratch in w2's dtype).
    sub = max(_sublane_multiple(x2d.dtype),
              _sublane_multiple(out_dtype),
              _sublane_multiple(w2.dtype))
    tm_eff = min(tm, _round_up(M, sub))
    # Ensure >= 2 row tiles when possible so both v7x TensorCores get work on
    # the "parallel" axis (v5e/v6e are single-core; harmless there).
    if _round_up(M, tm_eff) // tm_eff == 1 and M > sub:
        tm_eff = _round_up((M + 1) // 2, sub)
    Mp = _round_up(M, tm_eff)
    if Mp != M:
        x2d = jnp.pad(x2d, ((0, Mp - M), (0, 0)))

    grid = (Mp // tm_eff, Vp // tn_eff)

    out2d = pl.pallas_call(
        functools.partial(mlm_head_kernel, eps=eps),
        out_shape=jax.ShapeDtypeStruct((Mp, Vp), out_dtype),
        grid_spec=pltpu.PrefetchScalarGridSpec(
            num_scalar_prefetch=0,
            grid=grid,
            in_specs=[
                pl.BlockSpec((tm_eff, H), lambda i, j: (i, 0)),   # x row tile
                pl.BlockSpec((H, H), lambda i, j: (0, 0)),        # dense weight
                pl.BlockSpec((1, H), lambda i, j: (0, 0)),        # dense bias
                pl.BlockSpec((1, H), lambda i, j: (0, 0)),        # LN gamma
                pl.BlockSpec((1, H), lambda i, j: (0, 0)),        # LN beta
                pl.BlockSpec((H, tn_eff), lambda i, j: (0, j)),   # decoder W tile
                pl.BlockSpec((1, tn_eff), lambda i, j: (0, j)),   # decoder bias tile
            ],
            out_specs=pl.BlockSpec((tm_eff, tn_eff), lambda i, j: (i, j)),
            # h scratch in the decoder weight's dtype -> native bf16 MXU path
            # when weights are bf16, and half the scratch footprint.
            scratch_shapes=[pltpu.VMEM((tm_eff, H), w2.dtype)],
        ),
        compiler_params=pltpu.CompilerParams(
            dimension_semantics=("parallel", "arbitrary"),
            vmem_limit_bytes=_default_vmem_limit_bytes()),
    )(x2d, w1, b1, gamma, beta, w2, b2)

    return out2d[:M, :V].reshape(B, S, V)


def init_params(key, hidden_size, vocab_size, dtype=jnp.float32):
    k1, k2 = jax.random.split(key, 2)
    scale = 0.02
    return {
        # stored as (in, out) so the kernel does x @ W directly
        "dense_w": (scale * jax.random.normal(k1, (hidden_size, hidden_size),
                                              jnp.float32)).astype(dtype),
        "dense_b": jnp.zeros((1, hidden_size), jnp.float32),
        "ln_gamma": jnp.ones((1, hidden_size), jnp.float32),
        "ln_beta": jnp.zeros((1, hidden_size), jnp.float32),
        "decoder_w": (scale * jax.random.normal(k2, (hidden_size, vocab_size),
                                                jnp.float32)).astype(dtype),
        "decoder_b": jnp.zeros((1, vocab_size), jnp.float32),
    }


def _reference(sequence_output, params, eps):
    x = sequence_output.astype(jnp.float32)
    h = x @ params["dense_w"].astype(jnp.float32) + params["dense_b"]
    h = 0.5 * h * (1.0 + jax.lax.erf(h / jnp.sqrt(jnp.float32(2.0))))
    mean = jnp.mean(h, axis=-1, keepdims=True)
    var = jnp.mean((h - mean) ** 2, axis=-1, keepdims=True)
    h = (h - mean) * jax.lax.rsqrt(var + eps) * params["ln_gamma"] + params["ln_beta"]
    return h @ params["decoder_w"].astype(jnp.float32) + params["decoder_b"]


if __name__ == "__main__":
    # Small shapes consistent with a BERT MLM head (hidden=32, vocab=128).
    B, S, H, V = 2, 8, 32, 128
    key = jax.random.PRNGKey(0)
    kx, kp = jax.random.split(key)

    sequence_output = jax.random.normal(kx, (B, S, H), jnp.float32)
    params = init_params(kp, H, V)

    # One-time decoder padding (no-op here since V=128 already divides the tile).
    kernel_params = pad_decoder_params(params, tn=2048)

    out = bert_only_mlm_head(sequence_output, kernel_params, vocab_size=V, eps=1e-12)
    out = jax.block_until_ready(out)

    assert out.shape == (B, S, V), out.shape

    ref = _reference(sequence_output, params, 1e-12)
    assert jnp.allclose(out, ref, atol=1e-2, rtol=1e-2), \
        float(jnp.max(jnp.abs(out - ref)))

    print("KERNEL_OK")
</pallas_src>

<mosaic_0001>
module attributes {stable_mosaic.version = 11 : i64} {
  func.func @mlm_head_kernel(%arg0: i32, %arg1: i32, %arg2: memref<8x32xf32, #tpu.memory_space<vmem>>, %arg3: memref<32x32xf32, #tpu.memory_space<vmem>>, %arg4: memref<1x32xf32, #tpu.memory_space<vmem>>, %arg5: memref<1x32xf32, #tpu.memory_space<vmem>>, %arg6: memref<1x32xf32, #tpu.memory_space<vmem>>, %arg7: memref<32x128xf32, #tpu.memory_space<vmem>>, %arg8: memref<1x128xf32, #tpu.memory_space<vmem>>, %arg9: memref<8x128xf32, #tpu.memory_space<vmem>>, %arg10: memref<8x32xf32, #tpu.memory_space<vmem>>) attributes {dimension_semantics = [#tpu.dimension_semantics<parallel>, #tpu.dimension_semantics<arbitrary>], iteration_bounds = array<i64: 2, 1>, scalar_prefetch = 0 : i64, scratch_operands = 1 : i64, tpu.core_type = #tpu.core_type<tc>, window_params = [{transform_indices = @transform_0, window_bounds = array<i64: 8, 32>}, {pipeline_mode = #tpu.pipeline_mode<synchronous>, transform_indices = @transform_1, window_bounds = array<i64: 32, 32>}, {pipeline_mode = #tpu.pipeline_mode<synchronous>, transform_indices = @transform_2, window_bounds = array<i64: 1, 32>}, {pipeline_mode = #tpu.pipeline_mode<synchronous>, transform_indices = @transform_3, window_bounds = array<i64: 1, 32>}, {pipeline_mode = #tpu.pipeline_mode<synchronous>, transform_indices = @transform_4, window_bounds = array<i64: 1, 32>}, {transform_indices = @transform_5, window_bounds = array<i64: 32, 128>}, {transform_indices = @transform_6, window_bounds = array<i64: 1, 128>}, {transform_indices = @transform_7, window_bounds = array<i64: 8, 128>}]} {
    %c0_i32 = arith.constant 0 : i32
    %0 = arith.cmpi eq, %arg1, %c0_i32 : i32
    %1 = arith.extui %0 : i1 to i32
    %c0_i32_0 = arith.constant 0 : i32
    %2 = arith.cmpi ne, %1, %c0_i32_0 : i32
    scf.if %2 {
      %c0_8 = arith.constant 0 : index
      %c0_9 = arith.constant 0 : index
      %10 = vector.load %arg2[%c0_8, %c0_9] : memref<8x32xf32, #tpu.memory_space<vmem>>, vector<8x32xf32>
      %c0_10 = arith.constant 0 : index
      %c0_11 = arith.constant 0 : index
      %11 = vector.load %arg3[%c0_10, %c0_11] : memref<32x32xf32, #tpu.memory_space<vmem>>, vector<32x32xf32>
      %cst_12 = arith.constant dense<0.000000e+00> : vector<8x32xf32>
      %12 = tpu.matmul %10, %11, %cst_12 {dimension_numbers = #tpu.dot_dimension_numbers<[1], [0], [0], [1], [0, 0, 1, 1], [], []>} : vector<8x32xf32>, vector<32x32xf32>, vector<8x32xf32> -> vector<8x32xf32>
      %c0_13 = arith.constant 0 : index
      %c0_14 = arith.constant 0 : index
      %13 = vector.load %arg4[%c0_13, %c0_14] : memref<1x32xf32, #tpu.memory_space<vmem>>, vector<1x32xf32>
      %14 = vector.broadcast %13 : vector<1x32xf32> to vector<8x32xf32>
      %15 = arith.addf %12, %14 : vector<8x32xf32>
      %cst_15 = arith.constant 5.000000e-01 : f32
      %16 = vector.broadcast %cst_15 : f32 to vector<8x32xf32>
      %17 = arith.mulf %16, %15 : vector<8x32xf32>
      %cst_16 = arith.constant 0.707106769 : f32
      %18 = vector.broadcast %cst_16 : f32 to vector<8x32xf32>
      %19 = arith.mulf %15, %18 : vector<8x32xf32>
      %20 = math.erf %19 : vector<8x32xf32>
      %cst_17 = arith.constant 1.000000e+00 : f32
      %21 = vector.broadcast %cst_17 : f32 to vector<8x32xf32>
      %22 = arith.addf %21, %20 : vector<8x32xf32>
      %23 = arith.mulf %17, %22 : vector<8x32xf32>
      %cst_18 = arith.constant dense<0.000000e+00> : vector<8xf32>
      %24 = vector.multi_reduction <add>, %23, %cst_18 [1] : vector<8x32xf32> to vector<8xf32>
      %25 = vector.shape_cast %24 : vector<8xf32> to vector<8x1xf32>
      %cst_19 = arith.constant 3.200000e+01 : f32
      %26 = vector.broadcast %cst_19 : f32 to vector<8x1xf32>
      %27 = arith.divf %25, %26 : vector<8x1xf32>
      %28 = vector.broadcast %27 : vector<8x1xf32> to vector<8x32xf32>
      %29 = arith.subf %23, %28 : vector<8x32xf32>
      %30 = arith.mulf %29, %29 : vector<8x32xf32>
      %cst_20 = arith.constant dense<0.000000e+00> : vector<8xf32>
      %31 = vector.multi_reduction <add>, %30, %cst_20 [1] : vector<8x32xf32> to vector<8xf32>
      %32 = vector.shape_cast %31 : vector<8xf32> to vector<8x1xf32>
      %cst_21 = arith.constant 3.200000e+01 : f32
      %33 = vector.broadcast %cst_21 : f32 to vector<8x1xf32>
      %34 = arith.divf %32, %33 : vector<8x1xf32>
      %cst_22 = arith.constant 9.99999996E-13 : f32
      %35 = vector.broadcast %cst_22 : f32 to vector<8x1xf32>
      %36 = arith.addf %34, %35 : vector<8x1xf32>
      %37 = math.rsqrt %36 : vector<8x1xf32>
      %38 = vector.broadcast %37 : vector<8x1xf32> to vector<8x32xf32>
      %39 = arith.mulf %29, %38 : vector<8x32xf32>
      %c0_23 = arith.constant 0 : index
      %c0_24 = arith.constant 0 : index
      %40 = vector.load %arg5[%c0_23, %c0_24] : memref<1x32xf32, #tpu.memory_space<vmem>>, vector<1x32xf32>
      %41 = vector.broadcast %40 : vector<1x32xf32> to vector<8x32xf32>
      %42 = arith.mulf %39, %41 : vector<8x32xf32>
      %c0_25 = arith.constant 0 : index
      %c0_26 = arith.constant 0 : index
      %43 = vector.load %arg6[%c0_25, %c0_26] : memref<1x32xf32, #tpu.memory_space<vmem>>, vector<1x32xf32>
      %44 = vector.broadcast %43 : vector<1x32xf32> to vector<8x32xf32>
      %45 = arith.addf %42, %44 : vector<8x32xf32>
      %c0_27 = arith.constant 0 : index
      %c0_28 = arith.constant 0 : index
      %46 = vector.load %arg10[%c0_27, %c0_28] : memref<8x32xf32, #tpu.memory_space<vmem>>, vector<8x32xf32>
      tpu.vector_store %arg10[%c0_27, %c0_28], %45 {strides = array<i32>} : memref<8x32xf32, #tpu.memory_space<vmem>>, vector<8x32xf32>,
    } else {
    }
    %c0 = arith.constant 0 : index
    %c0_1 = arith.constant 0 : index
    %3 = vector.load %arg10[%c0, %c0_1] : memref<8x32xf32, #tpu.memory_space<vmem>>, vector<8x32xf32>
    %c0_2 = arith.constant 0 : index
    %c0_3 = arith.constant 0 : index
    %4 = vector.load %arg7[%c0_2, %c0_3] : memref<32x128xf32, #tpu.memory_space<vmem>>, vector<32x128xf32>
    %cst = arith.constant dense<0.000000e+00> : vector<8x128xf32>
    %5 = tpu.matmul %3, %4, %cst {dimension_numbers = #tpu.dot_dimension_numbers<[1], [0], [0], [1], [0, 0, 1, 1], [], []>} : vector<8x32xf32>, vector<32x128xf32>, vector<8x128xf32> -> vector<8x128xf32>
    %c0_4 = arith.constant 0 : index
    %c0_5 = arith.constant 0 : index
    %6 = vector.load %arg8[%c0_4, %c0_5] : memref<1x128xf32, #tpu.memory_space<vmem>>, vector<1x128xf32>
    %7 = vector.broadcast %6 : vector<1x128xf32> to vector<8x128xf32>
    %8 = arith.addf %5, %7 : vector<8x128xf32>
    %c0_6 = arith.constant 0 : index
    %c0_7 = arith.constant 0 : index
    %9 = vector.load %arg9[%c0_6, %c0_7] : memref<8x128xf32, #tpu.memory_space<vmem>>, vector<8x128xf32>
    tpu.vector_store %arg9[%c0_6, %c0_7], %8 {strides = array<i32>} : memref<8x128xf32, #tpu.memory_space<vmem>>, vector<8x128xf32>,
    return
  }
  func.func @transform_0(%arg0: i32, %arg1: i32) -> (i32, i32) {
    %c0_i32 = arith.constant 0 : i32
    %c0_i32_0 = arith.constant 0 : i32
    return %arg0, %c0_i32 : i32, i32
  }
  func.func @transform_1(%arg0: i32, %arg1: i32) -> (i32, i32) {
    %c0_i32 = arith.constant 0 : i32
    %c0_i32_0 = arith.constant 0 : i32
    %c0_i32_1 = arith.constant 0 : i32
    return %c0_i32, %c0_i32_0 : i32, i32
  }
  func.func @transform_2(%arg0: i32, %arg1: i32) -> (i32, i32) {
    %c0_i32 = arith.constant 0 : i32
    %c0_i32_0 = arith.constant 0 : i32
    %c0_i32_1 = arith.constant 0 : i32
    return %c0_i32, %c0_i32_0 : i32, i32
  }
  func.func @transform_3(%arg0: i32, %arg1: i32) -> (i32, i32) {
    %c0_i32 = arith.constant 0 : i32
    %c0_i32_0 = arith.constant 0 : i32
    %c0_i32_1 = arith.constant 0 : i32
    return %c0_i32, %c0_i32_0 : i32, i32
  }
  func.func @transform_4(%arg0: i32, %arg1: i32) -> (i32, i32) {
    %c0_i32 = arith.constant 0 : i32
    %c0_i32_0 = arith.constant 0 : i32
    %c0_i32_1 = arith.constant 0 : i32
    return %c0_i32, %c0_i32_0 : i32, i32
  }
  func.func @transform_5(%arg0: i32, %arg1: i32) -> (i32, i32) {
    %c0_i32 = arith.constant 0 : i32
    %c0_i32_0 = arith.constant 0 : i32
    return %c0_i32, %arg1 : i32, i32
  }
  func.func @transform_6(%arg0: i32, %arg1: i32) -> (i32, i32) {
    %c0_i32 = arith.constant 0 : i32
    %c0_i32_0 = arith.constant 0 : i32
    return %c0_i32, %arg1 : i32, i32
  }
  func.func @transform_7(%arg0: i32, %arg1: i32) -> (i32, i32) {
    %c0_i32 = arith.constant 0 : i32
    return %arg0, %arg1 : i32, i32
  }
}

</mosaic_0001>

<bundles_post_ra>
// kernel: tpu_custom_call.1
= control target key start
LH: loop header
LB: loop body
LE: loop exit
PB: predicated region body
PF: predicated region fallthrough
CT: control target
= control target key end

     0   :  { %s1153_s0 = inlined_call_operand.hbm [shape: f32[16,32], index: 0, kind: input, shape index: {}]   ;;  %s1154_s1 = inlined_call_operand.hbm [shape: f32[32,32], index: 1, kind: input, shape index: {}]   ;;  %s1155_s2 = inlined_call_operand.vmem [shape: f32[1,32], index: 2, kind: input, shape index: {}]   ;;  %s1156_s3 = inlined_call_operand.vmem [shape: f32[1,32], index: 3, kind: input, shape index: {}]   ;;  %s1157_s4 = inlined_call_operand.vmem [shape: f32[1,32], index: 4, kind: input, shape index: {}]   ;;  %s1158_s5 = inlined_call_operand.hbm [shape: f32[32,128], index: 5, kind: input, shape index: {}]   ;;  %s1159_s6 = inlined_call_operand.vmem [shape: f32[1,128], index: 6, kind: input, shape index: {}]   ;;  %s1160_s7 = inlined_call_operand.hbm [shape: f32[16,128], index: 7, kind: output, shape index: {}]  }
   0x1   :  { %1161 = sst [smem:[#allocation13_spill]] %s1154_s1 }
   0x2   :  { %12 = vsyncpa [#allocation4], 0 }
   0x3   :  { %14 = vsyncpa [#allocation4 + $0x1], 0 }
   0x4   :  { %15 = vsyncpa [#allocation7], 0 }
   0x5   :  { %16 = vsyncpa [#allocation5], 0 }
   0x6   :  { %18 = vsyncpa [#allocation5 + $0x1], 0  ;;  %s988_s24 = smov 0   ;;  %s990_s25 = smov 0  }
   0x7   :  { %s992_s26 = smov 0   ;;  %s994_s27 = smov 0  }
   0x8   :  { %s996_s28 = smov 0   ;;  %s998_s29 = smov 0  }
   0x9 LB: > { %s648_s30 = sadd.s32 4294967295, %s941_s29   ;;  %p650_p0 = scmp.ge.s32.totalorder %s941_s29, 1  ;;  %s941_s29 = sphi %s998_s29, %s24_s29   ;;  %s937_s28 = sphi %s996_s28, %s1172_s28   ;;  %s933_s27 = sphi %s994_s27, %s1171_s27   ;;  %s929_s26 = sphi %s992_s26, %s1170_s26   ;;  %s925_s25 = sphi %s990_s25, %s1169_s25   ;;  %s921_s24 = sphi %s988_s24, %s1168_s24  }
   0xa   : > { %p1022_p1 = scmp.eq.s32.totalorder %s648_s30, 0  ;;  %p231_p2 = scmp.lt.s32.totalorder %s941_s29, 3 }
   0xb   : > { %s1163_s1 = sld [smem:[#allocation13_spill]]  ;;  %s943_s13 = smov [#allocation6]  }
   0xc   : > { %p1030_p3 = pnand %p650_p0, %p231_p2  ;;  %s244_s14 = sshll.u32 %s943_s13, 4  ;;  %s245_s14 = int_to_ptr.vmem [resolvable:$true] %s244_s14 }
   0xd   : > { %p654_p6 = scmp.ge.s32.totalorder %s941_s29, 2  ;;  %s267_s17 = sshll.u32 %s1158_s5, 4  ;;  %s268_s17 = int_to_ptr.hbm [resolvable:$true] %s267_s17 }
   0xe   : > { %p681_p4 = pneg %p1030_p3  ;;  %s944_s18 = smov 128  }
   0xf   : > { %s945_s19 = smov 8   ;;  %s946_s20 = smov [#allocation8]  }
  0x10   : > { %p682_p5 = pnand %p681_p4, %p1022_p1  ;;  %s269_s21 = sshll.u32 %s946_s20, 4  ;;  %s270_s21 = int_to_ptr.vmem [resolvable:$true] %s269_s21 }
  0x11   : > { %s242_s11 = sshll.u32 %s1163_s1, 4  ;;  %s36_s22 = sadd.s32 1, %s937_s28  ;;  %s243_s11 = int_to_ptr.hbm [resolvable:$true] %s242_s11 }
  0x12   : > { %684 = dma.hbm_to_vmem [thread:$0]  (!%p682_p5), %s243_s11, 512, %s245_s14, [#allocation7], %s944_s18, %s944_s18, %s945_s19  }
  0x13   : > { %687 = dma.hbm_to_vmem [thread:$0]  (!%p682_p5), %s268_s17, 512, %s270_s21, [#allocation7], %s944_s18, %s944_s18, %s945_s19  }
  0x14   : > { %s649_s23 = sadd.s32 4294967294, %s941_s29   ;;  %p38_p7 = scmp.ge.s32.totalorder %s36_s22, 2 }
  0x15   : > { %s43_s9 = sadd.s32 1, %s929_s26  ;;  %p50_p8 = scmp.ne.s32.totalorder %s929_s26, %s925_s25 }
  0x16   : > { %s1174_s22 = smov (%p38_p7, %s36_s22), 0  ;;  %p51_p9 = scmp.eq.s32.totalorder %s941_s29, 0 }
  0x17   : > { %p56_p10 = scmp.ne.s32.totalorder %s925_s25, %s921_s24  ;;  %s40_s10 = ssub.s32 %s937_s28, %s1174_s22 }
  0x18   : > { %p218_p11 = scmp.eq.s32.totalorder %s648_s30, 1  ;;  %p41_p12 = scmp.eq.s32.totalorder %s40_s10, 0 }
  0x19   : > { %p1058_p13 = por %p1022_p1, %p56_p10  ;;  %p224_p2 = scmp.eq.s32.totalorder %s649_s23, 1 }
  0x1a   : > { %p1062_p0 = por %p218_p11, %p50_p8  ;;  %p52_p4 = por %p51_p9, %p50_p8 }
  0x1b   : > { %s1067_s14 = scalar_select %p41_p12, %s929_s26, %s43_s9  }
  0x1c   : > { %p1069_p5 = por %p224_p2, %p56_p10  ;;  %s289_s16 = sand.u32 1, %s929_s26  }
  0x1d   : > { %s656_s30 = sshll.u32 %s937_s28, 3  ;;  %p698_p7 = scmp.lt.s32.totalorder %s941_s29, 2 }
  0x1e   : > { %s655_s17 = sshll.u32 %s289_s16, 3  ;;  %s297_s20 = scalar_lea.hbm %s1153_s0, %s656_s30 }
  0x1f   : > { %s299_s21 = sshll.u32 %s297_s20, 4  ;;  %s293_s10 = scalar_lea.vmem [#allocation3], %s655_s17  ;;  %s300_s21 = int_to_ptr.hbm [resolvable:$true] %s299_s21 }
  0x20   : > { %s301_s1 = sshll.u32 %s293_s10, 4  ;;  %p689_p11 = pnand %p698_p7, %p52_p4  ;;  %s302_s1 = int_to_ptr.vmem [resolvable:$true] %s301_s1 }
  0x21   : > { %s290_s23 = scalar_lea.sflag [#allocation4], %s289_s16  ;;  %310 = sbr.rel (%p1030_p3) target bundleno = 635 (0x27b), region = 48 }
  0x22   : > { %691 = dma.hbm_to_vmem [thread:$0]  (!%p689_p11), %s300_s21, 128, %s302_s1, %s290_s23  }
  0x23   : > { %s1082_s9 = sand.u32 (!%p1030_p3), 1, %s925_s25  }
  0x24   : > { %s658_s18 = sshll.u32 (!%p1030_p3), %s1082_s9, 3  ;;  %s313_s30 = scalar_lea.sflag (!%p1030_p3), [#allocation4], %s1082_s9 }
  0x25   : > { %s316_s17 = scalar_lea.vmem (!%p1030_p3), [#allocation3], %s658_s18 }
  0x26   : > { %908 = dma.done.wait (%p1058_p13), %s313_s30, 128  }
  0x27   : > { %910 = vsyncadd (%p1058_p13), %s313_s30, 4294967168 }
  0x28   : > { %912 = dma.done.wait (%p1022_p1), [#allocation7], 1024  }
  0x29   : > { %914 = vsyncadd (%p1022_p1), [#allocation7], 4294966272  ;;  %v372_v0 = vld [vmem:[#allocation6 + $0x18] sm:$0xff]  ;;  %v371_v1 = vld [vmem:[#allocation6 + $0x10] sm:$0xff]  ;;  %vm377_vm0 = vcmask 261120   ;;  %v947_v48 = vmov 32.0  }
  0x2a   : > { %393 = vmatpush.msra.mxu0 %v372_v0  ;;  %v370_v2 = vld [vmem:[#allocation6 + $0x8] sm:$0xff]  ;;  %v369_v3 = vld [vmem:[#allocation6] sm:$0xff]  ;;  %v368_v4 = vld [vmem:[%s316_s17] sm:$0xff]  ;;  %s666_s20 = sshll.u32 %s933_s27, 3  ;;  %s360_s1 = scalar_lea.vmem [#allocation9], %s658_s18 }
  0x2b   : > { %v755_v5 = vld [vmem:[%s1155_s2] ss:$0 sm:$0xff]  ;;  %v489_v60 = vld [vmem:[#allocation8 + $0x18] sm:$0xff]  ;;  %v488_v61 = vld [vmem:[#allocation8 + $0x10] sm:$0xff]  ;;  %s531_s23 = scalar_lea.hbm %s1160_s7, %s666_s20  ;;  %s533_s12 = sshll.u32 %s360_s1, 4  ;;  %s534_s12 = int_to_ptr.vmem [resolvable:$true] %s533_s12 }
  0x2c   : > { %394 = vmatpush.msra.mxu0 %v371_v1  ;;  %510 = vmatpush.msra.mxu1 %v489_v60  ;;  %v487_v62 = vld [vmem:[#allocation8 + $0x8] sm:$0xff]  ;;  %v486_v1 = vld [vmem:[#allocation8] sm:$0xff]  ;;  %s535_s8 = sshll.u32 %s531_s23, 4  ;;  %s520_s11 = scalar_lea.sflag [#allocation5], %s1082_s9  ;;  %s536_s8 = int_to_ptr.hbm [resolvable:$true] %s535_s8 }
  0x2d   : > { %s869_s27 = sshra.s32 %s536_s8, 4  ;;  %s875_s21 = scalar_lea.hbm %s1160_s7, 16  ;;  %s870_s27 = int_to_ptr.hbm [resolvable:$true] %s869_s27 }
  0x2e   : > { %395 = vmatpush.msra.mxu0 %v370_v2  ;;  %511 = vmatpush.msra.mxu1 %v488_v61  ;;  %s871_s16 = scalar_lea.hbm %s870_s27, 8  ;;  %p876_p9 = scmp.lt.s32.totalorder %s870_s27, %s1160_s7 }
  0x2f   : > { %p872_p1 = scmp.ne.s32.totalorder %s870_s27, %s871_s16  ;;  %p877_p10 = scmp.lt.s32.totalorder %s875_s21, %s871_s16 }
  0x30   : > { %396 = vmatpush.msra.mxu0 %v369_v3  ;;  %512 = vmatpush.msra.mxu1 %v487_v62 }
  0x31   : > { %662 = vmatmul.msk.f32.vlgmr.msra.gmra.mxu0 %vm377_vm0, %v368_v4  ;;  %p873_p3 = pnand %p872_p1, %p1062_p0  ;;  %p878_p12 = por %p877_p10, %p876_p9 }
  0x32   : > { %513 = vmatpush.msra.mxu1 %v486_v1 }
  0x33   : > { %p874_p8 = pneg %p873_p3 }
  0x35   : > { %p879_p13 = pnand %p878_p12, %p874_p8 }
  0xae   : > { %v398_v6 = vpop.f32.mrf.mxu0 }
  0xaf   : > { %v399_v7 = vadd.f32 %v755_v5, %v398_v6 }
  0xb1   : > { %v402_v8 = vmul.f32 0.70710677, %v399_v7  ;;  %v401_v44 = vmul.f32 0.5, %v399_v7 }
  0xb3   : > { %v403_v9 = vmul.f32 %v402_v8, %v402_v8 }
  0xb5   : > { %v404_v10 = vmin.f32 %v403_v9, 16.0  ;;  %v756_v9 = vld [vmem:[%s1156_s3] ss:$0 sm:$0xff] }
  0xb7   : > { %v405_v11 = vmul.f32 2.1237322e-06, %v404_v10  ;;  %v416_v12 = vmul.f32 3.8918573e-05, %v404_v10 }
  0xb9   : > { %v406_v13 = vadd.f32 0.00028619796, %v405_v11  ;;  %v417_v14 = vadd.f32 0.001143296, %v416_v12  ;;  %v757_v11 = vld [vmem:[%s1157_s4] ss:$0 sm:$0xff] }
  0xbb   : > { %v407_v15 = vmul.f32 %v406_v13, %v404_v10  ;;  %v418_v16 = vmul.f32 %v417_v14, %v404_v10 }
  0xbd   : > { %v419_v17 = vadd.f32 0.014752088, %v418_v16  ;;  %v408_v18 = vadd.f32 0.0036580483, %v407_v15  ;;  %v758_v16 = vld [vmem:[%s1159_s6] ss:$0 sm:$0xff] }
  0xbf   : > { %v420_v19 = vmul.f32 %v419_v17, %v404_v10  ;;  %v409_v21 = vmul.f32 %v408_v18, %v404_v10 }
  0xc1   : > { %v421_v20 = vadd.f32 0.112945676, %v420_v19  ;;  %v410_v24 = vadd.f32 0.05243302, %v409_v21 }
  0xc3   : > { %v422_v22 = vmul.f32 %v421_v20, %v404_v10  ;;  %v411_v27 = vmul.f32 %v410_v24, %v404_v10 }
  0xc5   : > { %v423_v23 = vadd.f32 0.4994258, %v422_v22  ;;  %v412_v28 = vadd.f32 0.18741608, %v411_v27 }
  0xc7   : > { %v424_v25 = vmul.f32 %v423_v23, %v404_v10  ;;  %v413_v30 = vmul.f32 %v412_v28, %v404_v10 }
  0xc9   : > { %v425_v26 = vadd.f32 1.0, %v424_v25  ;;  %v414_v34 = vadd.f32 1.1283791, %v413_v30 }
  0xcb   : > { %759 = vrcp.f32 %v425_v26  ;;  %v437_v33 = vand.u32 2147483648, %v425_v26  ;;  %v435_v36 = vand.u32 2147483647, %v425_v26  ;;  %vm431_vm2 = vweird.f32 %v425_v26 }
  0xcc   : > { %v415_v39 = vmul.f32 %v414_v34, %v402_v8  ;;  %761 = vrcp.f32 %v947_v48 }
  0xcd   : > { %v438_v38 = vor.u32 1.1754944e-38, %v437_v33  ;;  %vm436_vm4 = vcmp.eq.f32.partialorder %v435_v36, 8.507059e+37 }
  0xd1   : > { %v760_v29 = vpop.eup %759 }
  0xd2   : > { %v427_v31 = vmul.f32 %v760_v29, %v425_v26  ;;  %vm432_vm1 = vweird.f32 %v760_v29  ;;  %v762_v49 = vpop.eup %761 }
  0xd3   : > { %vm433_vm3 = vmor %vm431_vm2, %vm432_vm1  ;;  %v449_v50 = vmul.f32 32.0, %v762_v49  ;;  %vm453_vm5 = vweird.f32 %v762_v49 }
  0xd4   : > { %v428_v32 = vsub.f32 1.0, %v427_v31 }
  0xd5   : > { %v450_v51 = vsub.f32 1.0, %v449_v50 }
  0xd6   : > { %v429_v35 = vmul.f32 %v760_v29, %v428_v32 }
  0xd7   : > { %v451_v52 = vmul.f32 %v762_v49, %v450_v51 }
  0xd8   : > { %v430_v37 = vadd.f32 %v760_v29, %v429_v35 }
  0xd9   : > { %v452_v53 = vadd.f32 %v762_v49, %v451_v52 }
  0xda   : > { %v434_v40 = vsel %vm433_vm3, %v760_v29, %v430_v37 }
  0xdb   : > { %v439_v41 = vsel %vm436_vm4, %v438_v38, %v434_v40  ;;  %v454_v54 = vsel %vm453_vm5, %v762_v49, %v452_v53 }
  0xdc   : > { %v440_v42 = vmul.f32 %v439_v41, %v415_v39 }
  0xde   : > { %v663_v43 = vclamps-f32 %v440_v42, 1.0 }
  0xe0   : > { %v443_v45 = vadd.f32 1.0, %v663_v43 }
  0xe2   : > { %v444_v46 = vmul.f32 %v443_v45, %v401_v44 }
  0xe4   : > { %v445_v47 = vsel %vm377_vm0, %v444_v46, 0.0 }
  0xe5   : > { %446 = vadd.xlane.f32.xlu0 %v445_v47 }
 0x158   : > { %v447_v55 = vpop.xlane.xlu0 %446 }
 0x159   : > { %v455_v56 = vmul.f32 %v454_v54, %v447_v55 }
 0x15b   : > { %v456_v57 = vsub.f32 %v444_v46, %v455_v56 }
 0x15d   : > { %v457_v58 = vmul.f32 %v456_v57, %v456_v57 }
 0x15f   : > { %v458_v59 = vsel %vm377_vm0, %v457_v58, 0.0 }
 0x160   : > { %459 = vadd.xlane.f32.xlu0 %v458_v59 }
 0x1d3   : > { %v460_v63 = vpop.xlane.xlu0 %459 }
 0x1d4   : > { %v461_v0 = vmul.f32 %v460_v63, %v454_v54 }
 0x1d6   : > { %v462_v2 = vadd.f32 1e-12, %v461_v0 }
 0x1d8   : > { %763 = vrsqrt.f32 %v462_v2  ;;  %vm469_vm7 = vweird.f32 %v462_v2 }
 0x1de   : > { %v764_v3 = vpop.eup %763 }
 0x1df   : > { %v464_v4 = vmul.f32 %v764_v3, %v462_v2  ;;  %vm470_vm6 = vweird.f32 %v764_v3 }
 0x1e0   : > { %vm471_vm8 = vmor %vm469_vm7, %vm470_vm6 }
 0x1e1   : > { %v465_v5 = vmul.f32 %v764_v3, %v464_v4 }
 0x1e3   : > { %v466_v6 = vmul.f32 0.5, %v465_v5 }
 0x1e5   : > { %v467_v7 = vsub.f32 1.5, %v466_v6 }
 0x1e7   : > { %v468_v8 = vmul.f32 %v764_v3, %v467_v7 }
 0x1e9   : > { %v472_v10 = vsel %vm471_vm8, %v764_v3, %v468_v8 }
 0x1ea   : > { %v473_v12 = vmul.f32 %v472_v10, %v456_v57 }
 0x1ec   : > { %v478_v13 = vmul.f32 %v756_v9, %v473_v12 }
 0x1ee   : > { %v483_v14 = vadd.f32 %v757_v11, %v478_v13 }
 0x1f0   : > { %484 = vst.msk [vmem:[#allocation2] sm:$0xff] %vm377_vm0, %v483_v14 }
 0x1f7   : > { %v485_v15 = vld [vmem:[#allocation2] sm:$0xff] }
 0x1f8   : > { %664 = vmatmul.msk.f32.vlgmr.msra.gmra.mxu1 %vm377_vm0, %v485_v15 }
 0x275   : > { %v515_v17 = vpop.f32.mrf.mxu1 }
 0x276   : > { %v516_v18 = vadd.f32 %v758_v16, %v515_v17 }
 0x278   : > { %518 = vst [vmem:[%s360_s1] sm:$0xff] %v516_v18 }
 0x279   : > { %882 = shalt.err (!%p879_p13)
}
 0x27a   : > { %679 = dma.vmem_to_hbm [thread:$0]  (%p1062_p0), %s534_s12, 128, %s536_s8, %s520_s11  }
 0x27b PF: > { %s547_s9 = sand.u32 1, %s921_s24   ;;  %p693_p2 = pnand %p654_p6, %p1069_p5 }
 0x27c   : > { %s548_s23 = scalar_lea.sflag [#allocation5], %s547_s9 }
 0x27d   : > { %p694_p4 = pneg %p693_p2 }
 0x27f   : > { %916 = dma.done.wait (%p694_p4), %s548_s23, 128  }
 0x280   : > { %918 = vsyncadd (%p694_p4), %s548_s23, 4294967168  ;;  %s24_s29 = sadd.s32 1, %s941_s29   ;;  %s1168_s24 = smov %s925_s25 }
 0x281   : > { %p21_p7 = scmp.ge.s32.totalorder %s24_s29, 4   ;;  %s1169_s25 = smov %s929_s26 }
 0x282   : > { %s1170_s26 = smov %s1067_s14  ;;  %s1171_s27 = smov %s937_s28 }
 0x283   : > { %s1172_s28 = smov %s1174_s22  ;;  %23 = sbr.rel (!%p21_p7) target bundleno = 9 (0x9), region = 109 }
 0x288   :  { %554 = vsyncpa [#allocation4], 1 }
 0x289   :  { %556 = vsyncpa [#allocation4 + $0x1], 1 }
 0x28a   :  { %557 = vsyncpa [#allocation7], 1 }
 0x28b   :  { %558 = vsyncpa [#allocation5], 1 }
 0x28c   :  { %560 = vsyncpa [#allocation5 + $0x1], 1 }

</bundles_post_ra>
